<compile_context>
chip_gen: v5e
topology: v5e:2x2
jax: 0.10.0
libtpu: 0.0.40
codegen_flags: <defaults>
</compile_context>

<pallas_src>
import functools

import jax
import jax.numpy as jnp
from jax import lax
from jax.experimental import pallas as pl
from jax.experimental.pallas import tpu as pltpu

LANES = 128
ACC_SUBLANES = 8            # accumulator (L, 8, 128): vreg-aligned, no XLU reduce per step
SUB_ROWS = 256              # in-kernel sub-chunk; bounds live f32 intermediates
MAX_TILE_ROWS = 2048        # >=512 rows already ~85% of HBM roofline; more buys ~1%
DMA_SLAB_BUDGET = 8 << 20   # double-buffered input DMA slabs per grid step (v5e-safe)


def _l1_sum_kernel(pred_ref, tgt_ref, acc_ref, *, n_levels, rows_total,
                   tile_rows, sub_rows, blocks_per_core):
    """Accumulate per-level (8,128) partial sums of |pred_l - target|.

    Grid: (cores, row-blocks-per-core). acc_ref (1, L, 8, 128) is resident across the
    row-block ("arbitrary") axis; each core owns its own accumulator slab.
    """
    c = pl.program_id(0)
    t = pl.program_id(1)

    @pl.when(t == 0)
    def _():
        acc_ref[...] = jnp.zeros_like(acc_ref)

    # Global sublane-row offset of this block within the (R, 128) pixel grid.
    row_start = (c * blocks_per_core + t) * tile_rows
    valid = rows_total - row_start            # rows of this block holding real data
    n_sub = tile_rows // sub_rows
    groups = sub_rows // ACC_SUBLANES

    def accumulate(masked):
        def body(i, carry):
            r0 = pl.multiple_of(i * sub_rows, sub_rows)
            p = pred_ref[:, pl.ds(r0, sub_rows), :].astype(jnp.float32)   # (L, sub, 128)
            g = tgt_ref[pl.ds(r0, sub_rows), :].astype(jnp.float32)       # (sub, 128)
            d = jnp.abs(p - g[None, :, :])
            if masked:
                # Pallas does not zero OOB/partial-block reads; garbage could be NaN,
                # so SELECT the valid rows (never multiply by a mask).
                rows = lax.broadcasted_iota(jnp.int32, (1, sub_rows, 1), 1) + r0
                d = jnp.where(rows < valid, d, 0.0)
            d = d.reshape(n_levels, groups, ACC_SUBLANES, LANES)
            acc_ref[...] += jnp.sum(d, axis=1)[None]      # VALU-only vreg adds
            return carry
        lax.fori_loop(0, n_sub, body, 0, unroll=True)

    @pl.when(valid >= tile_rows)      # full block: unmasked hot path
    def _():
        accumulate(masked=False)

    @pl.when(valid < tile_rows)       # ragged tail / clamped duplicate block
    def _():
        accumulate(masked=True)


def l1_loss_with_image(pred, target, loss_weight=1.0, reduction="mean",
                       weight=None, max_tile_rows=MAX_TILE_ROWS):
    """Pallas implementation of L1LossWithImage.forward (weight=None paths)."""
    if weight is not None:
        raise NotImplementedError("elementwise `weight` is not supported")   # TODO(synk)
    if reduction not in ("mean", "sum"):
        raise NotImplementedError(f"reduction={reduction!r} not supported")  # TODO(synk): 'none'

    L = int(pred.shape[0])
    img_shape = pred.shape[1:]
    target = jnp.broadcast_to(target, img_shape)

    N = 1
    for d in img_shape:
        N *= int(d)

    pred2 = pred.reshape(L, N)       # free (contiguous) reshape, no HBM copy
    tgt1 = target.reshape(N)

    # Lane alignment: N % 128 == 0 (usual for image tensors) needs NO padding and thus NO
    # HBM copy of pred. Ragged ROW blocks are masked in-kernel, so no chunk-alignment pad.
    # TODO(synk): the rare non-128-aligned fallback still materializes one jnp.pad copy.
    lane_pad = (-N) % LANES
    if lane_pad:
        pred2 = jnp.pad(pred2, ((0, 0), (0, lane_pad)))
        tgt1 = jnp.pad(tgt1, ((0, lane_pad),))
    R = (N + lane_pad) // LANES

    pred3 = pred2.reshape(L, R, LANES)   # free reshapes
    tgt2 = tgt1.reshape(R, LANES)

    pred_isz = jnp.dtype(pred3.dtype).itemsize
    tgt_isz = jnp.dtype(tgt2.dtype).itemsize
    # Sublane multiple of the packed dtype tiling: 8 f32, 16 bf16, 32 int8/fp8.
    sub_mult = max(32 // pred_isz, 32 // tgt_isz, ACC_SUBLANES)

    # VMEM-budget-derived tile: 2 pipeline buffers of (L + 1) row slabs per step.
    bytes_per_row = LANES * (L * pred_isz + tgt_isz)
    budget_rows = max(DMA_SLAB_BUDGET // (2 * bytes_per_row), sub_mult)
    tile_rows = min(int(max_tile_rows), budget_rows, max(R, sub_mult))
    if tile_rows >= SUB_ROWS:
        tile_rows = (tile_rows // SUB_ROWS) * SUB_ROWS
        sub_rows = SUB_ROWS
    else:
        tile_rows = max((tile_rows // sub_mult) * sub_mult, sub_mult)
        sub_rows = tile_rows

    T = -(-R // tile_rows)           # row blocks (last may be ragged -> masked in-kernel)
    NC = 2 if T >= 2 else 1          # megacore split on v7x; harmless serial loop elsewhere
    Tc = -(-T // NC)                 # row blocks per core
    last_block = T - 1

    # Clamp so duplicate blocks on an odd split stay in-bounds; they are fully masked
    # in-kernel (valid <= 0) so they contribute exactly zero.
    def pred_map(c, t):
        return (0, jnp.minimum(c * Tc + t, last_block), 0)

    def tgt_map(c, t):
        return (jnp.minimum(c * Tc + t, last_block), 0)

    def acc_map(c, t):
        return (c, 0, 0, 0)

    slab_bytes = 2 * tile_rows * LANES * (L * pred_isz + tgt_isz)
    vmem_limit = int(max(16 << 20, min(32 << 20, slab_bytes + (8 << 20))))

    pred_bytes = L * R * LANES * pred_isz
    tgt_bytes = R * LANES * tgt_isz

    kernel = functools.partial(
        _l1_sum_kernel, n_levels=L, rows_total=R, tile_rows=tile_rows,
        sub_rows=sub_rows, blocks_per_core=Tc)

    acc = pl.pallas_call(
        kernel,
        out_shape=jax.ShapeDtypeStruct((NC, L, ACC_SUBLANES, LANES), jnp.float32),
        grid=(NC, Tc),
        in_specs=[
            pl.BlockSpec((L, tile_rows, LANES), pred_map),
            pl.BlockSpec((tile_rows, LANES), tgt_map),
        ],
        out_specs=pl.BlockSpec((1, L, ACC_SUBLANES, LANES), acc_map),
        compiler_params=pltpu.CompilerParams(
            dimension_semantics=("parallel", "arbitrary"),
            vmem_limit_bytes=vmem_limit,
        ),
        cost_estimate=pl.CostEstimate(
            flops=4 * L * R * LANES,       # sub + abs + (select) + accumulate per element
            transcendentals=0,
            bytes_accessed=pred_bytes + tgt_bytes + NC * L * ACC_SUBLANES * LANES * 4,
        ),
    )(pred3, tgt2)

    # Tiny final combine (NC x L x 8 x 128 scalars) stays in plain JAX.
    total = jnp.sum(acc)
    if reduction == "mean":
        total = total / jnp.float32(N)
    return loss_weight * total


def _reference(pred, target, loss_weight=1.0, reduction="mean"):
    """Pure-JAX reference mirroring the PyTorch forward (VGG features unused)."""
    tgt = target.astype(jnp.float32)
    loss = 0.0
    for l in range(pred.shape[0]):
        diff = jnp.abs(pred[l].astype(jnp.float32) - tgt)
        per = jnp.mean(diff) if reduction == "mean" else jnp.sum(diff)
        loss = loss + loss_weight * per
    return loss


def _check(pred, target, loss_weight=1.0, reduction="mean", **kw):
    out = jax.block_until_ready(
        l1_loss_with_image(pred, target, loss_weight, reduction, **kw))
    ref = _reference(pred, target, loss_weight, reduction)
    assert jnp.allclose(out, ref, rtol=1e-4, atol=1e-6), (out, ref)


if __name__ == "__main__":
    # Module has no learned weights affecting the output (VGG features are unused);
    # only the loss_weight hyperparameter matters.
    loss_weight = 1.0
    key = jax.random.PRNGKey(0)
    k1, k2, k3, k4, k5, k6 = jax.random.split(key, 6)

    # pred: stack of L single-channel maps (each `image` is (C,H,W), C=1 as implied by
    # image.expand(3, -1, -1)); target matches one image.
    L, C, H, W = 3, 1, 64, 64
    pred = jax.random.normal(k1, (L, C, H, W), dtype=jnp.float32)
    target = jax.random.normal(k2, (C, H, W), dtype=jnp.float32)

    _check(pred, target, loss_weight)                       # single full block, unmasked
    _check(pred, target, loss_weight, max_tile_rows=8)      # multi-step + megacore axis
    _check(pred, target, loss_weight, reduction="sum")      # sum reduction

    # Ragged row count (R=36): tail masking + clamped duplicate block on an odd split.
    pred_r = jax.random.normal(k3, (2, 1, 72, 64), dtype=jnp.float32)
    target_r = jax.random.normal(k4, (1, 72, 64), dtype=jnp.float32)
    _check(pred_r, target_r, loss_weight, max_tile_rows=8)

    # bf16 pred: packed-dtype sublane multiple (16) + partial-block masking, cast in-kernel.
    pred_b = jax.random.normal(k5, (2, 1, 48, 64), dtype=jnp.bfloat16)
    target_b = jax.random.normal(k6, (1, 48, 64), dtype=jnp.float32)
    _check(pred_b, target_b, loss_weight)

    # Larger map exercising the in-kernel sub-chunk loop (tile_rows=512, sub_rows=256).
    pred_l = jax.random.normal(k1, (3, 1, 256, 256), dtype=jnp.float32)
    target_l = jax.random.normal(k2, (1, 256, 256), dtype=jnp.float32)
    _check(pred_l, target_l, loss_weight)

    print("KERNEL_OK")
</pallas_src>

<mosaic_0001>
module attributes {stable_mosaic.version = 11 : i64} {
  func.func @_l1_sum_kernel(%arg0: i32, %arg1: i32, %arg2: memref<3x32x128xf32, #tpu.memory_space<vmem>>, %arg3: memref<32x128xf32, #tpu.memory_space<vmem>>, %arg4: memref<1x3x8x128xf32, #tpu.memory_space<vmem>>) attributes {dimension_semantics = [#tpu.dimension_semantics<parallel>, #tpu.dimension_semantics<arbitrary>], iteration_bounds = array<i64: 1, 1>, scalar_prefetch = 0 : i64, scratch_operands = 0 : i64, tpu.core_type = #tpu.core_type<tc>, window_params = [{transform_indices = @transform_0, window_bounds = array<i64: 3, 32, 128>}, {transform_indices = @transform_1, window_bounds = array<i64: 32, 128>}, {transform_indices = @transform_2, window_bounds = array<i64: 1, 3, 8, 128>}]} {
    %c0_i32 = arith.constant 0 : i32
    %0 = arith.cmpi eq, %arg1, %c0_i32 : i32
    %1 = arith.extui %0 : i1 to i32
    %c0_i32_0 = arith.constant 0 : i32
    %2 = arith.cmpi ne, %1, %c0_i32_0 : i32
    scf.if %2 {
      %cst = arith.constant 0.000000e+00 : f32
      %13 = vector.broadcast %cst : f32 to vector<1x3x8x128xf32>
      %c0 = arith.constant 0 : index
      %c0_6 = arith.constant 0 : index
      %c0_7 = arith.constant 0 : index
      %c0_8 = arith.constant 0 : index
      %14 = vector.load %arg4[%c0, %c0_6, %c0_7, %c0_8] : memref<1x3x8x128xf32, #tpu.memory_space<vmem>>, vector<1x3x8x128xf32>
      tpu.vector_store %arg4[%c0, %c0_6, %c0_7, %c0_8], %13 {strides = array<i32>} : memref<1x3x8x128xf32, #tpu.memory_space<vmem>>, vector<1x3x8x128xf32>,
    } else {
    }
    %c1_i32 = arith.constant 1 : i32
    %3 = arith.muli %arg0, %c1_i32 : i32
    %4 = arith.addi %3, %arg1 : i32
    %c32_i32 = arith.constant 32 : i32
    %5 = arith.muli %4, %c32_i32 : i32
    %c32_i32_1 = arith.constant 32 : i32
    %6 = arith.subi %c32_i32_1, %5 : i32
    %c32_i32_2 = arith.constant 32 : i32
    %7 = arith.cmpi sge, %6, %c32_i32_2 : i32
    %8 = arith.extui %7 : i1 to i32
    %c0_i32_3 = arith.constant 0 : i32
    %9 = arith.cmpi ne, %8, %c0_i32_3 : i32
    scf.if %9 {
      %c0_i32_6 = arith.constant 0 : i32
      %c32_i32_7 = arith.constant 32 : i32
      %13 = arith.muli %c0_i32_6, %c32_i32_7 : i32
      %14 = tpu.assume_multiple %13, 32 : i32
      %c0 = arith.constant 0 : index
      %15 = arith.index_cast %14 : i32 to index
      %c0_8 = arith.constant 0 : index
      %16 = vector.load %arg2[%c0, %15, %c0_8] : memref<3x32x128xf32, #tpu.memory_space<vmem>>, vector<3x32x128xf32>
      %17 = arith.index_cast %14 : i32 to index
      %c0_9 = arith.constant 0 : index
      %18 = vector.load %arg3[%17, %c0_9] : memref<32x128xf32, #tpu.memory_space<vmem>>, vector<32x128xf32>
      %19 = vector.shape_cast %18 : vector<32x128xf32> to vector<1x32x128xf32>
      %20 = vector.broadcast %19 : vector<1x32x128xf32> to vector<3x32x128xf32>
      %21 = arith.subf %16, %20 : vector<3x32x128xf32>
      %22 = math.absf %21 : vector<3x32x128xf32>
      %23 = vector.shape_cast %22 : vector<3x32x128xf32> to vector<3x4x8x128xf32>
      %c0_10 = arith.constant 0 : index
      %c0_11 = arith.constant 0 : index
      %c0_12 = arith.constant 0 : index
      %c0_13 = arith.constant 0 : index
      %24 = vector.load %arg4[%c0_10, %c0_11, %c0_12, %c0_13] : memref<1x3x8x128xf32, #tpu.memory_space<vmem>>, vector<1x3x8x128xf32>
      %cst = arith.constant dense<0.000000e+00> : vector<3x8x128xf32>
      %25 = vector.multi_reduction <add>, %23, %cst [1] : vector<3x4x8x128xf32> to vector<3x8x128xf32>
      %26 = vector.shape_cast %25 : vector<3x8x128xf32> to vector<1x3x8x128xf32>
      %27 = arith.addf %24, %26 : vector<1x3x8x128xf32>
      %c0_14 = arith.constant 0 : index
      %c0_15 = arith.constant 0 : index
      %c0_16 = arith.constant 0 : index
      %c0_17 = arith.constant 0 : index
      %28 = vector.load %arg4[%c0_14, %c0_15, %c0_16, %c0_17] : memref<1x3x8x128xf32, #tpu.memory_space<vmem>>, vector<1x3x8x128xf32>
      tpu.vector_store %arg4[%c0_14, %c0_15, %c0_16, %c0_17], %27 {strides = array<i32>} : memref<1x3x8x128xf32, #tpu.memory_space<vmem>>, vector<1x3x8x128xf32>,
      %c1_i32_18 = arith.constant 1 : i32
    } else {
    }
    %c32_i32_4 = arith.constant 32 : i32
    %10 = arith.cmpi slt, %6, %c32_i32_4 : i32
    %11 = arith.extui %10 : i1 to i32
    %c0_i32_5 = arith.constant 0 : i32
    %12 = arith.cmpi ne, %11, %c0_i32_5 : i32
    scf.if %12 {
      %c0_i32_6 = arith.constant 0 : i32
      %c32_i32_7 = arith.constant 32 : i32
      %13 = arith.muli %c0_i32_6, %c32_i32_7 : i32
      %14 = tpu.assume_multiple %13, 32 : i32
      %c0 = arith.constant 0 : index
      %15 = arith.index_cast %14 : i32 to index
      %c0_8 = arith.constant 0 : index
      %16 = vector.load %arg2[%c0, %15, %c0_8] : memref<3x32x128xf32, #tpu.memory_space<vmem>>, vector<3x32x128xf32>
      %17 = arith.index_cast %14 : i32 to index
      %c0_9 = arith.constant 0 : index
      %18 = vector.load %arg3[%17, %c0_9] : memref<32x128xf32, #tpu.memory_space<vmem>>, vector<32x128xf32>
      %19 = vector.shape_cast %18 : vector<32x128xf32> to vector<1x32x128xf32>
      %20 = vector.broadcast %19 : vector<1x32x128xf32> to vector<3x32x128xf32>
      %21 = arith.subf %16, %20 : vector<3x32x128xf32>
      %22 = math.absf %21 : vector<3x32x128xf32>
      %23 = tpu.iota {dimensions = array<i32: 1>} : vector<1x32x1xi32>
      %24 = vector.broadcast %14 : i32 to vector<1x32x1xi32>
      %25 = arith.addi %23, %24 : vector<1x32x1xi32>
      %26 = vector.broadcast %6 : i32 to vector<1x32x1xi32>
      %27 = arith.cmpi slt, %25, %26 : vector<1x32x1xi32>
      %cst = arith.constant 0.000000e+00 : f32
      %28 = vector.shape_cast %27 : vector<1x32x1xi1> to vector<1x32x1xi1>
      %29 = vector.broadcast %28 : vector<1x32x1xi1> to vector<3x32x128xi1>
      %30 = vector.broadcast %cst : f32 to vector<3x32x128xf32>
      %31 = arith.select %29, %22, %30 : vector<3x32x128xi1>, vector<3x32x128xf32>
      %32 = vector.shape_cast %31 : vector<3x32x128xf32> to vector<3x4x8x128xf32>
      %c0_10 = arith.constant 0 : index
      %c0_11 = arith.constant 0 : index
      %c0_12 = arith.constant 0 : index
      %c0_13 = arith.constant 0 : index
      %33 = vector.load %arg4[%c0_10, %c0_11, %c0_12, %c0_13] : memref<1x3x8x128xf32, #tpu.memory_space<vmem>>, vector<1x3x8x128xf32>
      %cst_14 = arith.constant dense<0.000000e+00> : vector<3x8x128xf32>
      %34 = vector.multi_reduction <add>, %32, %cst_14 [1] : vector<3x4x8x128xf32> to vector<3x8x128xf32>
      %35 = vector.shape_cast %34 : vector<3x8x128xf32> to vector<1x3x8x128xf32>
      %36 = arith.addf %33, %35 : vector<1x3x8x128xf32>
      %c0_15 = arith.constant 0 : index
      %c0_16 = arith.constant 0 : index
      %c0_17 = arith.constant 0 : index
      %c0_18 = arith.constant 0 : index
      %37 = vector.load %arg4[%c0_15, %c0_16, %c0_17, %c0_18] : memref<1x3x8x128xf32, #tpu.memory_space<vmem>>, vector<1x3x8x128xf32>
      tpu.vector_store %arg4[%c0_15, %c0_16, %c0_17, %c0_18], %36 {strides = array<i32>} : memref<1x3x8x128xf32, #tpu.memory_space<vmem>>, vector<1x3x8x128xf32>,
      %c1_i32_19 = arith.constant 1 : i32
    } else {
    }
    return
  }
  func.func @transform_0(%arg0: i32, %arg1: i32) -> (i32, i32, i32) {
    %c1_i32 = arith.constant 1 : i32
    %0 = arith.muli %arg0, %c1_i32 : i32
    %1 = arith.addi %0, %arg1 : i32
    %c0_i32 = arith.constant 0 : i32
    %2 = arith.minsi %1, %c0_i32 : i32
    %c0_i32_0 = arith.constant 0 : i32
    %c0_i32_1 = arith.constant 0 : i32
    %c0_i32_2 = arith.constant 0 : i32
    return %c0_i32_0, %2, %c0_i32_1 : i32, i32, i32
  }
  func.func @transform_1(%arg0: i32, %arg1: i32) -> (i32, i32) {
    %c1_i32 = arith.constant 1 : i32
    %0 = arith.muli %arg0, %c1_i32 : i32
    %1 = arith.addi %0, %arg1 : i32
    %c0_i32 = arith.constant 0 : i32
    %2 = arith.minsi %1, %c0_i32 : i32
    %c0_i32_0 = arith.constant 0 : i32
    %c0_i32_1 = arith.constant 0 : i32
    return %2, %c0_i32_0 : i32, i32
  }
  func.func @transform_2(%arg0: i32, %arg1: i32) -> (i32, i32, i32, i32) {
    %c0_i32 = arith.constant 0 : i32
    %c0_i32_0 = arith.constant 0 : i32
    %c0_i32_1 = arith.constant 0 : i32
    %c0_i32_2 = arith.constant 0 : i32
    return %arg0, %c0_i32, %c0_i32_0, %c0_i32_1 : i32, i32, i32, i32
  }
}

</mosaic_0001>

<bundles_post_ra>
// kernel: tpu_custom_call.1
= control target key start
LH: loop header
LB: loop body
LE: loop exit
PB: predicated region body
PF: predicated region fallthrough
CT: control target
= control target key end

     0   :  { %7 = vsyncpa [#allocation3], 0  ;;  %s379_s0 = inlined_call_operand.hbm [shape: f32[3,32,128], index: 0, kind: input, shape index: {}]   ;;  %s380_s1 = inlined_call_operand.hbm [shape: f32[32,128], index: 1, kind: input, shape index: {}]   ;;  %s381_s2 = inlined_call_operand.hbm [shape: f32[1,3,8,128], index: 2, kind: output, shape index: {}]  }
   0x1   :  { %8 = vsyncpa [#allocation6], 0 }
   0x2   :  { %9 = vsyncpa [#allocation4], 0  ;;  %s20_s11 = sshll.u32 %s379_s0, 4  ;;  %s341_s12 = smov [#allocation2]   ;;  %s21_s11 = int_to_ptr.hbm [resolvable:$true] %s20_s11 }
   0x3   :  { %s22_s13 = sshll.u32 %s341_s12, 4  ;;  %s39_s16 = sshll.u32 %s380_s1, 4  ;;  %s23_s13 = int_to_ptr.vmem [resolvable:$true] %s22_s13  ;;  %s40_s16 = int_to_ptr.hbm [resolvable:$true] %s39_s16 }
   0x4   :  { %s342_s17 = smov 128   ;;  %s343_s18 = smov 8  }
   0x5   :  { %28 = dma.hbm_to_vmem [thread:$0]  %s21_s11, 1536, %s23_s13, [#allocation3], %s342_s17, %s342_s17, %s343_s18  }
   0x6   :  { %s344_s19 = smov [#allocation5]  }
   0x7   :  { %s41_s20 = sshll.u32 %s344_s19, 4  ;;  %s42_s20 = int_to_ptr.vmem [resolvable:$true] %s41_s20 }
   0x8   :  { %47 = dma.hbm_to_vmem [thread:$0]  %s40_s16, 512, %s42_s20, [#allocation6], %s342_s17, %s342_s17, %s343_s18  }
   0x9   :  { %335 = dma.done.wait [#allocation3], 1536  }
   0xa   :  { %336 = vsyncadd [#allocation3], 4294965760 }
   0xb   :  { %337 = dma.done.wait [#allocation6], 512  }
   0xc   :  { %338 = vsyncadd [#allocation6], 4294966784  ;;  %v78_v0 = vld [vmem:[#allocation2] sm:$0xff]  ;;  %v79_v1 = vld [vmem:[#allocation2 + $0x8] sm:$0xff]  ;;  %s345_s0 = smov [#allocation7]   ;;  %s239_s23 = sshll.u32 %s381_s2, 4  ;;  %s240_s23 = int_to_ptr.hbm [resolvable:$true] %s239_s23 }
   0xd   :  { %v80_v2 = vld [vmem:[#allocation2 + $0x10] sm:$0xff]  ;;  %v81_v3 = vld [vmem:[#allocation2 + $0x18] sm:$0xff]  ;;  %v90_v4 = vld [vmem:[#allocation5] sm:$0xff]  ;;  %s237_s1 = sshll.u32 %s345_s0, 4  ;;  %s238_s1 = int_to_ptr.vmem [resolvable:$true] %s237_s1 }
   0xe   :  { %v91_v5 = vld [vmem:[#allocation5 + $0x8] sm:$0xff]  ;;  %v92_v6 = vld [vmem:[#allocation5 + $0x10] sm:$0xff]  ;;  %v93_v7 = vld [vmem:[#allocation5 + $0x18] sm:$0xff]  ;;  %v94_v8 = vsub.f32 %v78_v0, %v90_v4 }
   0xf   :  { %v95_v9 = vsub.f32 %v79_v1, %v91_v5  ;;  %v82_v10 = vld [vmem:[#allocation2 + $0x20] sm:$0xff]  ;;  %v96_v11 = vsub.f32 %v80_v2, %v92_v6  ;;  %v97_v12 = vsub.f32 %v81_v3, %v93_v7  ;;  %v83_v13 = vld [vmem:[#allocation2 + $0x28] sm:$0xff]  ;;  %v84_v14 = vld [vmem:[#allocation2 + $0x30] sm:$0xff] }
  0x10   :  { %v85_v15 = vld [vmem:[#allocation2 + $0x38] sm:$0xff]  ;;  %v98_v16 = vsub.f32 %v82_v10, %v90_v4  ;;  %v106_v17 = vand.u32 2147483647, %v94_v8  ;;  %v99_v19 = vsub.f32 %v83_v13, %v91_v5  ;;  %v100_v20 = vsub.f32 %v84_v14, %v92_v6  ;;  %v86_v21 = vld [vmem:[#allocation2 + $0x40] sm:$0xff]  ;;  %v87_v22 = vld [vmem:[#allocation2 + $0x48] sm:$0xff] }
  0x11   :  { %v107_v18 = vand.u32 2147483647, %v95_v9  ;;  %v108_v23 = vand.u32 2147483647, %v96_v11  ;;  %v109_v24 = vand.u32 2147483647, %v97_v12  ;;  %v101_v25 = vsub.f32 %v85_v15, %v93_v7 }
  0x12   :  { %v110_v26 = vand.u32 2147483647, %v98_v16  ;;  %v111_v28 = vand.u32 2147483647, %v99_v19  ;;  %v112_v29 = vand.u32 2147483647, %v100_v20  ;;  %v102_v32 = vsub.f32 %v86_v21, %v90_v4 }
  0x13   :  { %v121_v27 = vadd.f32 %v107_v18, %v106_v17  ;;  %v88_v30 = vld [vmem:[#allocation2 + $0x50] sm:$0xff]  ;;  %v89_v31 = vld [vmem:[#allocation2 + $0x58] sm:$0xff]  ;;  %v103_v33 = vsub.f32 %v87_v22, %v91_v5  ;;  %v113_v37 = vand.u32 2147483647, %v101_v25 }
  0x14   :  { %v104_v34 = vsub.f32 %v88_v30, %v92_v6  ;;  %v105_v35 = vsub.f32 %v89_v31, %v93_v7  ;;  %v124_v38 = vadd.f32 %v111_v28, %v110_v26  ;;  %v114_v39 = vand.u32 2147483647, %v102_v32 }
  0x15   :  { %v122_v36 = vadd.f32 %v121_v27, %v108_v23  ;;  %v115_v40 = vand.u32 2147483647, %v103_v33 }
  0x16   :  { %v116_v41 = vand.u32 2147483647, %v104_v34  ;;  %v125_v43 = vadd.f32 %v124_v38, %v112_v29  ;;  %v117_v44 = vand.u32 2147483647, %v105_v35 }
  0x17   :  { %v123_v42 = vadd.f32 %v122_v36, %v109_v24  ;;  %v127_v45 = vadd.f32 %v115_v40, %v114_v39 }
  0x18   :  { %v126_v46 = vadd.f32 %v125_v43, %v113_v37 }
  0x19   :  { %v128_v47 = vadd.f32 %v127_v45, %v116_v41  ;;  %133 = vst [vmem:[#allocation7] sm:$0xff] %v123_v42 }
  0x1a   :  { %134 = vst [vmem:[#allocation7 + $0x8] sm:$0xff] %v126_v46 }
  0x1b   :  { %v129_v48 = vadd.f32 %v128_v47, %v117_v44 }
  0x1d   :  { %135 = vst [vmem:[#allocation7 + $0x10] sm:$0xff] %v129_v48 }
  0x1e   :  { %245 = dma.vmem_to_hbm [thread:$0]  %s238_s1, 384, %s240_s23, [#allocation4], %s342_s17, %s342_s17, %s343_s18  }
  0x1f   :  { %339 = dma.done.wait [#allocation4], 384  }
  0x20   :  { %340 = vsyncadd [#allocation4], 4294966912 }
  0x21   :  { %250 = vsyncpa [#allocation3], 1 }
  0x22   :  { %251 = vsyncpa [#allocation6], 1 }
  0x23   :  { %252 = vsyncpa [#allocation4], 1 }

</bundles_post_ra>
